<compile_context>
chip_gen: v6e
topology: v6e:2x2x1
jax: 0.10.0
libtpu: 0.0.40
codegen_flags: <defaults>
</compile_context>

<pallas_src>
import functools
import math

import jax
import jax.numpy as jnp
from jax import lax
from jax.experimental import pallas as pl
from jax.experimental.pallas import tpu as pltpu

# ---- model dims (small, consistent with the module) ----
BATCH = 2
SEQ = 8
HIDDEN_IN = 32      # config.hidden_size
HIDDEN_MID = 200    # RobertaLMHead default hidden_size=200
VOCAB = 256         # config.vocab_size
LN_EPS = 1e-5       # config.layer_norm_eps

_INV_SQRT2 = 1.0 / math.sqrt(2.0)   # Python float -> trace literal


def _gelu_exact(x):
    # matches torch.nn.functional.gelu default (erf-based)
    return 0.5 * x * (1.0 + lax.erf(x * _INV_SQRT2))


def lm_head_kernel(x_ref, w1_ref, b1_ref, g_ref, beta_ref, w2_ref, b2_ref, o_ref,
                   *, eps):
    # eps is a Python float (compile-time literal), never a captured jnp array.
    x = x_ref[...].astype(jnp.float32)                                  # (N, H_in)

    # dense (MXU)
    h = jnp.dot(x, w1_ref[...], preferred_element_type=jnp.float32)     # (N, H_mid)
    h = h + b1_ref[...]

    # gelu (exact, erf-based -> EUP)
    h = _gelu_exact(h)

    # layer norm over last axis (XLU cross-lane reduce)
    mu = jnp.mean(h, axis=-1, keepdims=True)
    diff = h - mu
    var = jnp.mean(diff * diff, axis=-1, keepdims=True)
    hn = diff * lax.rsqrt(var + eps)
    hn = hn * g_ref[...] + beta_ref[...]

    # decoder (MXU), lane-dense 256-wide output
    out = jnp.dot(hn, w2_ref[...], preferred_element_type=jnp.float32)  # (N, V)
    out = out + b2_ref[...]
    o_ref[...] = out.astype(o_ref.dtype)


def _vmem_full_spec():
    # Full-extent block resident in VMEM (gridless call -> index_map unused).
    return pl.BlockSpec(memory_space=pltpu.MemorySpace.VMEM)


@functools.partial(jax.jit, static_argnames=("eps",))
def roberta_lm_head(features, w1, b1, gamma, beta, w2, b2, *, eps=LN_EPS):
    """features: (B, S, H_in) float32 -> logits (B, S, V) float32."""
    B, S, H_in = features.shape
    H_mid = w1.shape[1]
    V = w2.shape[1]
    N = B * S
    x2d = features.reshape(N, H_in)

    # biases / LN params as (1, dim) rows for clean broadcast inside the kernel
    b1_2d = b1.reshape(1, H_mid)
    g_2d = gamma.reshape(1, H_mid)
    beta_2d = beta.reshape(1, H_mid)
    b2_2d = b2.reshape(1, V)

    itemsize = jnp.dtype(features.dtype).itemsize
    cost = pl.CostEstimate(
        flops=2 * N * H_in * H_mid + 2 * N * H_mid * V,
        transcendentals=N * H_mid,  # one erf per hidden activation
        bytes_accessed=itemsize * (x2d.size + w1.size + b1.size + gamma.size
                                   + beta.size + w2.size + b2.size + N * V),
    )

    # Gridless: one invocation, every operand resident in VMEM.
    # TODO(synk): at real RoBERTa sizes (H=768, V~50k) tile w2/b2/out along the
    #             vocab axis with a grid, cast x/w1/hn/w2 to bf16, and set
    #             vmem_limit_bytes (mandatory on v7x's 64 MiB VMEM).
    out2d = pl.pallas_call(
        functools.partial(lm_head_kernel, eps=float(eps)),
        out_shape=jax.ShapeDtypeStruct((N, V), features.dtype),
        in_specs=[_vmem_full_spec() for _ in range(7)],
        out_specs=_vmem_full_spec(),
        cost_estimate=cost,
    )(x2d, w1, b1_2d, g_2d, beta_2d, w2, b2_2d)

    return out2d.reshape(B, S, V)


def _reference(features, w1, b1, gamma, beta, w2, b2, eps=LN_EPS):
    h = features @ w1 + b1
    h = _gelu_exact(h)
    mu = jnp.mean(h, axis=-1, keepdims=True)
    var = jnp.mean((h - mu) ** 2, axis=-1, keepdims=True)
    hn = (h - mu) * lax.rsqrt(var + eps)
    hn = hn * gamma + beta
    return hn @ w2 + b2


if __name__ == "__main__":
    key = jax.random.PRNGKey(0)
    k_x, k_w1, k_b1, k_w2 = jax.random.split(key, 4)

    features = jax.random.normal(k_x, (BATCH, SEQ, HIDDEN_IN), dtype=jnp.float32)

    # deterministic synthetic parameters (module shapes from __init__)
    w1 = 0.02 * jax.random.normal(k_w1, (HIDDEN_IN, HIDDEN_MID), dtype=jnp.float32)
    b1 = 0.01 * jax.random.normal(k_b1, (HIDDEN_MID,), dtype=jnp.float32)
    gamma = jnp.ones((HIDDEN_MID,), dtype=jnp.float32)
    beta = jnp.zeros((HIDDEN_MID,), dtype=jnp.float32)
    w2 = 0.02 * jax.random.normal(k_w2, (HIDDEN_MID, VOCAB), dtype=jnp.float32)
    b2 = jnp.zeros((VOCAB,), dtype=jnp.float32)   # decoder.bias tied to self.bias (zeros)

    logits = roberta_lm_head(features, w1, b1, gamma, beta, w2, b2)
    logits = jax.block_until_ready(logits)

    ref = _reference(features, w1, b1, gamma, beta, w2, b2)
    assert logits.shape == (BATCH, SEQ, VOCAB)
    assert jnp.allclose(logits, ref, atol=1e-4, rtol=1e-4), "mismatch vs reference"

    print("KERNEL_OK")
</pallas_src>

<mosaic_0001>
module attributes {stable_mosaic.version = 11 : i64} {
  func.func @lm_head_kernel(%arg0: memref<16x32xf32, #tpu.memory_space<vmem>>, %arg1: memref<32x200xf32, #tpu.memory_space<vmem>>, %arg2: memref<1x200xf32, #tpu.memory_space<vmem>>, %arg3: memref<1x200xf32, #tpu.memory_space<vmem>>, %arg4: memref<1x200xf32, #tpu.memory_space<vmem>>, %arg5: memref<200x256xf32, #tpu.memory_space<vmem>>, %arg6: memref<1x256xf32, #tpu.memory_space<vmem>>, %arg7: memref<16x256xf32, #tpu.memory_space<vmem>>) attributes {dimension_semantics = [], scalar_prefetch = 0 : i64, scratch_operands = 0 : i64, tpu.core_type = #tpu.core_type<tc>} {
    %c0 = arith.constant 0 : index
    %c0_0 = arith.constant 0 : index
    %0 = vector.load %arg0[%c0, %c0_0] : memref<16x32xf32, #tpu.memory_space<vmem>>, vector<16x32xf32>
    %c0_1 = arith.constant 0 : index
    %c0_2 = arith.constant 0 : index
    %1 = vector.load %arg1[%c0_1, %c0_2] : memref<32x200xf32, #tpu.memory_space<vmem>>, vector<32x200xf32>
    %cst = arith.constant dense<0.000000e+00> : vector<16x200xf32>
    %2 = tpu.matmul %0, %1, %cst {dimension_numbers = #tpu.dot_dimension_numbers<[1], [0], [0], [1], [0, 0, 1, 1], [], []>} : vector<16x32xf32>, vector<32x200xf32>, vector<16x200xf32> -> vector<16x200xf32>
    %c0_3 = arith.constant 0 : index
    %c0_4 = arith.constant 0 : index
    %3 = vector.load %arg2[%c0_3, %c0_4] : memref<1x200xf32, #tpu.memory_space<vmem>>, vector<1x200xf32>
    %4 = vector.broadcast %3 : vector<1x200xf32> to vector<16x200xf32>
    %5 = arith.addf %2, %4 : vector<16x200xf32>
    %cst_5 = arith.constant 5.000000e-01 : f32
    %6 = vector.broadcast %cst_5 : f32 to vector<16x200xf32>
    %7 = arith.mulf %6, %5 : vector<16x200xf32>
    %cst_6 = arith.constant 0.707106769 : f32
    %8 = vector.broadcast %cst_6 : f32 to vector<16x200xf32>
    %9 = arith.mulf %5, %8 : vector<16x200xf32>
    %10 = math.erf %9 : vector<16x200xf32>
    %cst_7 = arith.constant 1.000000e+00 : f32
    %11 = vector.broadcast %cst_7 : f32 to vector<16x200xf32>
    %12 = arith.addf %11, %10 : vector<16x200xf32>
    %13 = arith.mulf %7, %12 : vector<16x200xf32>
    %cst_8 = arith.constant dense<0.000000e+00> : vector<16xf32>
    %14 = vector.multi_reduction <add>, %13, %cst_8 [1] : vector<16x200xf32> to vector<16xf32>
    %15 = vector.shape_cast %14 : vector<16xf32> to vector<16x1xf32>
    %cst_9 = arith.constant 2.000000e+02 : f32
    %16 = vector.broadcast %cst_9 : f32 to vector<16x1xf32>
    %17 = arith.divf %15, %16 : vector<16x1xf32>
    %18 = vector.broadcast %17 : vector<16x1xf32> to vector<16x200xf32>
    %19 = arith.subf %13, %18 : vector<16x200xf32>
    %20 = arith.mulf %19, %19 : vector<16x200xf32>
    %cst_10 = arith.constant dense<0.000000e+00> : vector<16xf32>
    %21 = vector.multi_reduction <add>, %20, %cst_10 [1] : vector<16x200xf32> to vector<16xf32>
    %22 = vector.shape_cast %21 : vector<16xf32> to vector<16x1xf32>
    %cst_11 = arith.constant 2.000000e+02 : f32
    %23 = vector.broadcast %cst_11 : f32 to vector<16x1xf32>
    %24 = arith.divf %22, %23 : vector<16x1xf32>
    %cst_12 = arith.constant 9.99999974E-6 : f32
    %25 = vector.broadcast %cst_12 : f32 to vector<16x1xf32>
    %26 = arith.addf %24, %25 : vector<16x1xf32>
    %27 = math.rsqrt %26 : vector<16x1xf32>
    %28 = vector.broadcast %27 : vector<16x1xf32> to vector<16x200xf32>
    %29 = arith.mulf %19, %28 : vector<16x200xf32>
    %c0_13 = arith.constant 0 : index
    %c0_14 = arith.constant 0 : index
    %30 = vector.load %arg3[%c0_13, %c0_14] : memref<1x200xf32, #tpu.memory_space<vmem>>, vector<1x200xf32>
    %31 = vector.broadcast %30 : vector<1x200xf32> to vector<16x200xf32>
    %32 = arith.mulf %29, %31 : vector<16x200xf32>
    %c0_15 = arith.constant 0 : index
    %c0_16 = arith.constant 0 : index
    %33 = vector.load %arg4[%c0_15, %c0_16] : memref<1x200xf32, #tpu.memory_space<vmem>>, vector<1x200xf32>
    %34 = vector.broadcast %33 : vector<1x200xf32> to vector<16x200xf32>
    %35 = arith.addf %32, %34 : vector<16x200xf32>
    %c0_17 = arith.constant 0 : index
    %c0_18 = arith.constant 0 : index
    %36 = vector.load %arg5[%c0_17, %c0_18] : memref<200x256xf32, #tpu.memory_space<vmem>>, vector<200x256xf32>
    %cst_19 = arith.constant dense<0.000000e+00> : vector<16x256xf32>
    %37 = tpu.matmul %35, %36, %cst_19 {dimension_numbers = #tpu.dot_dimension_numbers<[1], [0], [0], [1], [0, 0, 1, 1], [], []>} : vector<16x200xf32>, vector<200x256xf32>, vector<16x256xf32> -> vector<16x256xf32>
    %c0_20 = arith.constant 0 : index
    %c0_21 = arith.constant 0 : index
    %38 = vector.load %arg6[%c0_20, %c0_21] : memref<1x256xf32, #tpu.memory_space<vmem>>, vector<1x256xf32>
    %39 = vector.broadcast %38 : vector<1x256xf32> to vector<16x256xf32>
    %40 = arith.addf %37, %39 : vector<16x256xf32>
    %c0_22 = arith.constant 0 : index
    %c0_23 = arith.constant 0 : index
    %41 = vector.load %arg7[%c0_22, %c0_23] : memref<16x256xf32, #tpu.memory_space<vmem>>, vector<16x256xf32>
    tpu.vector_store %arg7[%c0_22, %c0_23], %40 {strides = array<i32>} : memref<16x256xf32, #tpu.memory_space<vmem>>, vector<16x256xf32>,
    return
  }
}

</mosaic_0001>

<bundles_post_ra>
// kernel: roberta_lm_head.1
= control target key start
LH: loop header
LB: loop body
LE: loop exit
PB: predicated region body
PF: predicated region fallthrough
CT: control target
= control target key end

     0   :  { %12 = vsyncpa [#allocation3], 0  ;;  %s674_s0 = inlined_call_operand.hbm [shape: f32[16,32], index: 0, kind: input, shape index: {}]   ;;  %s675_s1 = inlined_call_operand.hbm [shape: f32[32,200], index: 1, kind: input, shape index: {}]   ;;  %s676_s2 = inlined_call_operand.vmem [shape: f32[1,200], index: 2, kind: input, shape index: {}]   ;;  %s677_s3 = inlined_call_operand.vmem [shape: f32[1,200], index: 3, kind: input, shape index: {}]   ;;  %s678_s4 = inlined_call_operand.vmem [shape: f32[1,200], index: 4, kind: input, shape index: {}]   ;;  %s679_s5 = inlined_call_operand.hbm [shape: f32[200,256], index: 5, kind: input, shape index: {}]   ;;  %s680_s6 = inlined_call_operand.vmem [shape: f32[1,256], index: 6, kind: input, shape index: {}]   ;;  %s681_s7 = inlined_call_operand.hbm [shape: f32[16,256], index: 7, kind: output, shape index: {}]  }
   0x1   :  { %13 = vsyncpa [#allocation6], 0 }
   0x2   :  { %14 = vsyncpa [#allocation4], 0  ;;  %s542_s24 = smov [#allocation5]  }
   0x3   :  { %s32_s25 = sshll.u32 %s542_s24, 4  ;;  %s33_s25 = int_to_ptr.vmem [resolvable:$true] %s32_s25 }
   0x4   :  { %s464_s26 = scalar_lea.vmem %s33_s25, 1024  ;;  %p469_p1 = scmp.lt.s32.totalorder %s33_s25, %s33_s25 }
   0x5   :  { %p465_p0 = scmp.ne.s32.totalorder %s33_s25, %s464_s26  ;;  %p470_p2 = scmp.lt.s32.totalorder %s464_s26, %s464_s26 }
   0x7   :  { %p471_p3 = por %p470_p2, %p469_p1 }
   0x9   :  { %p472_p4 = pnand %p471_p3, %p465_p0 }
   0xb   :  { %475 = shalt.err (!%p472_p4)
}
   0xc   :  { %s543_s27 = smov 256   ;;  %s544_s28 = smov 16  }
   0xd   :  { %38 = dma.hbm_to_vmem [thread:$0]  %s675_s1, 1024, %s33_s25, [#allocation6], %s543_s27, %s543_s27, %s544_s28  }
   0xe   :  { %s545_s8 = smov [#allocation2]  }
   0xf   :  { %s20_s9 = sshll.u32 %s545_s8, 4  ;;  %s21_s9 = int_to_ptr.vmem [resolvable:$true] %s20_s9 }
  0x10   :  { %s484_s10 = scalar_lea.vmem %s21_s9, 256  ;;  %p489_p6 = scmp.lt.s32.totalorder %s21_s9, %s21_s9 }
  0x11   :  { %p485_p5 = scmp.ne.s32.totalorder %s21_s9, %s484_s10  ;;  %p490_p7 = scmp.lt.s32.totalorder %s484_s10, %s484_s10 }
  0x13   :  { %p491_p8 = por %p490_p7, %p489_p6 }
  0x15   :  { %p492_p9 = pnand %p491_p8, %p485_p5 }
  0x17   :  { %495 = shalt.err (!%p492_p9)
}
  0x18   :  { %s546_s11 = smov 128   ;;  %s547_s12 = smov 8  }
  0x19   :  { %26 = dma.hbm_to_vmem [thread:$0]  %s674_s0, 256, %s21_s9, [#allocation3], %s546_s11, %s546_s11, %s547_s12  }
  0x1a   :  { %s548_s15 = smov [#allocation7]  }
  0x1b   :  { %s50_s16 = sshll.u32 %s548_s15, 4  ;;  %s51_s16 = int_to_ptr.vmem [resolvable:$true] %s50_s16 }
  0x1c   :  { %s504_s1 = scalar_lea.vmem %s51_s16, 6400  ;;  %p509_p11 = scmp.lt.s32.totalorder %s51_s16, %s51_s16 }
  0x1d   :  { %p505_p10 = scmp.ne.s32.totalorder %s51_s16, %s504_s1  ;;  %p510_p12 = scmp.lt.s32.totalorder %s504_s1, %s504_s1 }
  0x1f   :  { %p511_p13 = por %p510_p12, %p509_p11 }
  0x21   :  { %p512_p0 = pnand %p511_p13, %p505_p10 }
  0x23   :  { %515 = shalt.err (!%p512_p0)
}
  0x24   :  { %56 = dma.hbm_to_vmem [thread:$0]  %s679_s5, 6400, %s51_s16, [#allocation6], %s543_s27, %s543_s27, %s544_s28  }
  0x25   :  { %536 = dma.done.wait [#allocation3], 256  }
  0x26   :  { %537 = vsyncadd [#allocation3], 4294967040 }
  0x27   :  { %538 = dma.done.wait [#allocation6], 7424  }
  0x28   :  { %539 = vsyncadd [#allocation6], 4294959872  ;;  %v549_v0 = vmov 0.0   ;;  %v77_v1 = vld [vmem:[#allocation5 + $0x38] sm:$0xff]  ;;  %v76_v2 = vld [vmem:[#allocation5 + $0x30] sm:$0xff]  ;;  %vm90_vm0 = vcmask 261120   ;;  %v80_v11 = vlaneseq }
  0x29   :  { %161 = vmatprep.mubr.f32.mxu0 %v549_v0  ;;  %v75_v3 = vld [vmem:[#allocation5 + $0x28] sm:$0xff]  ;;  %121 = vmatprep.subr.mxu0 %v77_v1  ;;  %v74_v4 = vld [vmem:[#allocation5 + $0x20] sm:$0xff]  ;;  %v73_v5 = vld [vmem:[#allocation5 + $0x18] sm:$0xff]  ;;  %vm194_vm1 = vcmask 588800   ;;  %s550_s22 = smov [#allocation8]  }
  0x2a   :  { %122 = vmatpush1.msra.mxu0 %v76_v2  ;;  %v72_v6 = vld [vmem:[#allocation5 + $0x10] sm:$0xff]  ;;  %v71_v7 = vld [vmem:[#allocation5 + $0x8] sm:$0xff]  ;;  %v70_v8 = vld [vmem:[#allocation5] sm:$0xff]  ;;  %v81_v12 = vshrl.u32 %v80_v11, 7  ;;  %s418_s23 = sshll.u32 %s550_s22, 4  ;;  %s419_s23 = int_to_ptr.vmem [resolvable:$true] %s418_s23 }
  0x2b   :  { %123 = vmatprep.subr.mxu0 %v75_v3  ;;  %v68_v9 = vld [vmem:[#allocation2] sm:$0xff]  ;;  %v69_v10 = vld [vmem:[#allocation2 + $0x8] sm:$0xff]  ;;  %v293_v52 = vld [vmem:[#allocation7 + $0xe8] sm:$0xff]  ;;  %p521_p2 = scmp.lt.s32.totalorder %s419_s23, %s419_s23 }
  0x2c   :  { %124 = vmatpush1.msra.mxu0 %v74_v4  ;;  %v606_v13 = vsub.s32 0, %v81_v12  ;;  %v78_v14 = vld [vmem:[%s676_s2] sm:$0x3]  ;;  %v611_v15 = vsub.s32 1, %v81_v12  ;;  %v295_v50 = vld [vmem:[#allocation7 + $0xf8] sm:$0xff]  ;;  %v292_v53 = vld [vmem:[#allocation7 + $0xe0] sm:$0xff] }
  0x2d   :  { %125 = vmatprep.subr.mxu0 %v73_v5  ;;  %v294_v51 = vld [vmem:[#allocation7 + $0xf0] sm:$0xff]  ;;  %332 = vmatprep.subr.mxu1 %v295_v50  ;;  %v291_v54 = vld [vmem:[#allocation7 + $0xd8] sm:$0xff]  ;;  %v289_v56 = vld [vmem:[#allocation7 + $0xc8] sm:$0xff] }
  0x2e   :  { %126 = vmatpush1.msra.mxu0 %v72_v6  ;;  %v83_v16 = vrot.slane %v78_v14, %v606_v13  ;;  %v87_v17 = vrot.slane %v78_v14, %v611_v15  ;;  %333 = vmatpush1.msra.mxu1 %v294_v51  ;;  %v290_v55 = vld [vmem:[#allocation7 + $0xd0] sm:$0xff]  ;;  %v288_v57 = vld [vmem:[#allocation7 + $0xc0] sm:$0xff]  ;;  %v287_v58 = vld [vmem:[#allocation7 + $0xb8] sm:$0xff] }
  0x2f   :  { %127 = vmatprep.subr.mxu0 %v71_v7  ;;  %334 = vmatprep.subr.mxu1 %v293_v52  ;;  %v286_v59 = vld [vmem:[#allocation7 + $0xb0] sm:$0xff]  ;;  %v285_v60 = vld [vmem:[#allocation7 + $0xa8] sm:$0xff]  ;;  %v284_v61 = vld [vmem:[#allocation7 + $0xa0] sm:$0xff] }
  0x30   :  { %128 = vmatpush1.msra.mxu0 %v70_v8  ;;  %335 = vmatpush1.msra.mxu1 %v292_v53  ;;  %v283_v62 = vld [vmem:[#allocation7 + $0x98] sm:$0xff]  ;;  %v282_v63 = vld [vmem:[#allocation7 + $0x90] sm:$0xff]  ;;  %v280_v1 = vld [vmem:[#allocation7 + $0x80] sm:$0xff] }
  0x31   :  { %431 = vmatmul.mubr.msk.f32.vlgmr.msra.gmra.mxu0 %vm90_vm0, %v68_v9  ;;  %336 = vmatprep.subr.mxu1 %v291_v54  ;;  %v279_v2 = vld [vmem:[#allocation7 + $0x78] sm:$0xff]  ;;  %v278_v3 = vld [vmem:[#allocation7 + $0x70] sm:$0xff]  ;;  %v277_v4 = vld [vmem:[#allocation7 + $0x68] sm:$0xff] }
  0x32   :  { %167 = vmatprep.mubr.f32.mxu0 %v549_v0  ;;  %337 = vmatpush1.msra.mxu1 %v290_v55  ;;  %v281_v0 = vld [vmem:[#allocation7 + $0x88] sm:$0xff]  ;;  %v276_v5 = vld [vmem:[#allocation7 + $0x60] sm:$0xff]  ;;  %v275_v6 = vld [vmem:[#allocation7 + $0x58] sm:$0xff] }
  0x33   :  { %338 = vmatprep.subr.mxu1 %v289_v56  ;;  %v274_v7 = vld [vmem:[#allocation7 + $0x50] sm:$0xff]  ;;  %v273_v8 = vld [vmem:[#allocation7 + $0x48] sm:$0xff]  ;;  %v272_v9 = vld [vmem:[#allocation7 + $0x40] sm:$0xff] }
  0x34   :  { %339 = vmatpush1.msra.mxu1 %v288_v57  ;;  %v299_v50 = vld [vmem:[#allocation7 + $0x118] sm:$0xff]  ;;  %v298_v51 = vld [vmem:[#allocation7 + $0x110] sm:$0xff]  ;;  %v297_v52 = vld [vmem:[#allocation7 + $0x108] sm:$0xff] }
  0x35   :  { %432 = vmatmul.mubr.msk.f32.gmra.mxu0 %vm90_vm0, %v69_v10  ;;  %340 = vmatprep.subr.mxu1 %v287_v58  ;;  %v271_v10 = vld [vmem:[#allocation7 + $0x38] sm:$0xff]  ;;  %v296_v53 = vld [vmem:[#allocation7 + $0x100] sm:$0xff] }
  0x36   :  { %341 = vmatpush1.msra.mxu1 %v286_v59 }
  0x37   :  { %342 = vmatprep.subr.mxu1 %v285_v60  ;;  %v232_v60 = vld [vmem:[%s677_s3] sm:$0x3] }
  0x38   :  { %343 = vmatpush1.msra.mxu1 %v284_v61  ;;  %v248_v61 = vld [vmem:[%s678_s4] sm:$0x3] }
  0x39   :  { %344 = vmatprep.subr.mxu1 %v283_v62  ;;  %v237_v62 = vrot.slane %v232_v60, %v606_v13 }
  0x3a   :  { %345 = vmatpush1.msra.mxu1 %v282_v63  ;;  %v241_v63 = vrot.slane %v232_v60, %v611_v15 }
  0x3b   :  { %346 = vmatprep.subr.mxu1 %v281_v0 }
  0x3c   :  { %347 = vmatpush1.msra.mxu1 %v280_v1 }
  0x3d   :  { %348 = vmatprep.subr.mxu1 %v279_v2  ;;  %v253_v2 = vrot.slane %v248_v61, %v606_v13 }
  0x3e   :  { %349 = vmatpush1.msra.mxu1 %v278_v3  ;;  %v257_v3 = vrot.slane %v248_v61, %v611_v15 }
  0x3f   :  { %350 = vmatprep.subr.mxu1 %v277_v4 }
  0x40   :  { %351 = vmatpush1.msra.mxu1 %v276_v5 }
  0x41   :  { %352 = vmatprep.subr.mxu1 %v275_v6 }
  0x42   :  { %353 = vmatpush1.msra.mxu1 %v274_v7 }
  0x43   :  { %354 = vmatprep.subr.mxu1 %v273_v8 }
  0x44   :  { %355 = vmatpush1.msra.mxu1 %v272_v9 }
  0x45   :  { %356 = vmatprep.subr.mxu1 %v271_v10 }
  0xf1   :  { %v163_v18 = vpop.f32.mrf.mxu0 }
  0xf2   :  { %v164_v19 = vadd.f32 %v163_v18, %v83_v16 }
  0xf3   :  { %v165_v20 = vpop.f32.mrf.mxu0 }
  0xf4   :  { %v178_v21 = vmul.f32 0.70710677, %v164_v19  ;;  %v166_v22 = vadd.f32 %v165_v20, %v87_v17  ;;  %v174_v36 = vmul.f32 0.5, %v164_v19 }
  0xf5   :  { %v169_v23 = vpop.f32.mrf.mxu0 }
  0xf6   :  { %444 = verf.f32 %v178_v21  ;;  %v179_v24 = vmul.f32 0.70710677, %v166_v22  ;;  %v170_v25 = vadd.f32 %v169_v23, %v83_v16  ;;  %v175_v33 = vmul.f32 0.5, %v166_v22 }
  0xf7   :  { %v171_v26 = vpop.f32.mrf.mxu0 }
  0xf8   :  { %446 = verf.f32 %v179_v24  ;;  %v180_v27 = vmul.f32 0.70710677, %v170_v25  ;;  %v172_v28 = vadd.f32 %v171_v26, %v87_v17  ;;  %v176_v44 = vmul.f32 0.5, %v170_v25 }
  0xfa   :  { %448 = verf.f32 %v180_v27  ;;  %v181_v29 = vmul.f32 0.70710677, %v172_v28  ;;  %v177_v41 = vmul.f32 0.5, %v172_v28 }
  0xfc   :  { %450 = verf.f32 %v181_v29  ;;  %v270_v29 = vld [vmem:[#allocation7 + $0x30] sm:$0xff] }
  0xfd   :  { %357 = vmatpush1.msra.mxu1 %v270_v29 }
 0x103   :  { %v445_v30 = vpop.eup %444 }
 0x104   :  { %v186_v32 = vadd.f32 1.0, %v445_v30  ;;  %v269_v30 = vld [vmem:[#allocation7 + $0x28] sm:$0xff] }
 0x105   :  { %v447_v31 = vpop.eup %446  ;;  %358 = vmatprep.subr.mxu1 %v269_v30 }
 0x106   :  { %v187_v34 = vadd.f32 1.0, %v447_v31  ;;  %v617_v39 = vmul.f32 %v186_v32, %v174_v36  ;;  %v268_v31 = vld [vmem:[#allocation7 + $0x20] sm:$0xff]  ;;  %v267_v32 = vld [vmem:[#allocation7 + $0x18] sm:$0xff]  ;;  %v313_v36 = vld [vmem:[#allocation7 + $0x188] sm:$0xff] }
 0x107   :  { %v449_v35 = vpop.eup %448  ;;  %359 = vmatpush1.msra.mxu1 %v268_v31 }
 0x108   :  { %v615_v37 = vmul.f32 %v187_v34, %v175_v33  ;;  %v188_v40 = vadd.f32 1.0, %v449_v35  ;;  %360 = vmatprep.subr.mxu1 %v267_v32  ;;  %v266_v33 = vld [vmem:[#allocation7 + $0x10] sm:$0xff]  ;;  %v265_v34 = vld [vmem:[#allocation7 + $0x8] sm:$0xff]  ;;  %v264_v35 = vld [vmem:[#allocation7] sm:$0xff] }
 0x109   :  { %v451_v38 = vpop.eup %450  ;;  %361 = vmatpush1.msra.mxu1 %v266_v33 }
 0x10a   :  { %v195_v42 = vsel %vm194_vm1, %v615_v37, 0.0  ;;  %v189_v43 = vadd.f32 1.0, %v451_v38  ;;  %v192_v47 = vmul.f32 %v188_v40, %v176_v44  ;;  %362 = vmatprep.subr.mxu1 %v265_v34  ;;  %v311_v38 = vld [vmem:[#allocation7 + $0x178] sm:$0xff]  ;;  %v309_v40 = vld [vmem:[#allocation7 + $0x168] sm:$0xff] }
 0x10b   :  { %v196_v45 = vadd.f32 %v195_v42, %v617_v39  ;;  %363 = vmatpush1.msra.mxu1 %v264_v35  ;;  %v307_v42 = vld [vmem:[#allocation7 + $0x158] sm:$0xff]  ;;  %v305_v44 = vld [vmem:[#allocation7 + $0x148] sm:$0xff] }
 0x10c   :  { %v622_v46 = vmul.f32 %v189_v43, %v177_v41  ;;  %378 = vmatprep.subr.mxu1 %v313_v36  ;;  %v308_v41 = vld [vmem:[#allocation7 + $0x160] sm:$0xff]  ;;  %v306_v43 = vld [vmem:[#allocation7 + $0x150] sm:$0xff] }
 0x10d   :  { %197 = vadd.xlane.f32.xlu0 %v196_v45  ;;  %v304_v45 = vld [vmem:[#allocation7 + $0x140] sm:$0xff] }
 0x10e   :  { %v199_v48 = vsel %vm194_vm1, %v622_v46, 0.0 }
 0x10f   :  { %v200_v49 = vadd.f32 %v199_v48, %v192_v47  ;;  %v301_v48 = vld [vmem:[#allocation7 + $0x128] sm:$0xff] }
 0x111   :  { %201 = vadd.xlane.f32.xlu0 %v200_v49  ;;  %v300_v49 = vld [vmem:[#allocation7 + $0x120] sm:$0xff] }
 0x196   :  { %v198_v11 = vpop.xlane.xlu0 %197 }
 0x197   :  { %v204_v12 = vmul.f32 0.005, %v198_v11 }
 0x199   :  { %v627_v14 = vsub.f32 %v617_v39, %v204_v12  ;;  %v630_v16 = vsub.f32 %v615_v37, %v204_v12  ;;  %v312_v37 = vld [vmem:[#allocation7 + $0x180] sm:$0xff]  ;;  %v310_v39 = vld [vmem:[#allocation7 + $0x170] sm:$0xff] }
 0x19a   :  { %v202_v17 = vpop.xlane.xlu0 %201  ;;  %379 = vmatpush2.msra.mxu1 %v312_v37 }
 0x19b   :  { %v205_v18 = vmul.f32 0.005, %v202_v17  ;;  %v210_v19 = vmul.f32 %v627_v14, %v627_v14  ;;  %v211_v20 = vmul.f32 %v630_v16, %v630_v16  ;;  %380 = vmatprep.subr.mxu1 %v311_v38 }
 0x19c   :  { %381 = vmatpush2.msra.mxu1 %v310_v39 }
 0x19d   :  { %v636_v21 = vsub.f32 %v192_v47, %v205_v18  ;;  %v639_v22 = vsub.f32 %v622_v46, %v205_v18  ;;  %v214_v23 = vsel %vm194_vm1, %v211_v20, 0.0  ;;  %382 = vmatprep.subr.mxu1 %v309_v40  ;;  %v303_v46 = vld [vmem:[#allocation7 + $0x138] sm:$0xff]  ;;  %v302_v47 = vld [vmem:[#allocation7 + $0x130] sm:$0xff] }
 0x19e   :  { %v215_v24 = vadd.f32 %v214_v23, %v210_v19  ;;  %383 = vmatpush2.msra.mxu1 %v308_v41 }
 0x19f   :  { %v213_v25 = vmul.f32 %v639_v22, %v639_v22  ;;  %v212_v26 = vmul.f32 %v636_v21, %v636_v21  ;;  %384 = vmatprep.subr.mxu1 %v307_v42 }
 0x1a0   :  { %216 = vadd.xlane.f32.xlu1 %v215_v24  ;;  %385 = vmatpush2.msra.mxu1 %v306_v43 }
 0x1a1   :  { %v218_v27 = vsel %vm194_vm1, %v213_v25, 0.0  ;;  %386 = vmatprep.subr.mxu1 %v305_v44 }
 0x1a2   :  { %v219_v28 = vadd.f32 %v218_v27, %v212_v26  ;;  %387 = vmatpush2.msra.mxu1 %v304_v45 }
 0x1a3   :  { %388 = vmatprep.subr.mxu1 %v303_v46 }
 0x1a4   :  { %220 = vadd.xlane.f32.xlu1 %v219_v28  ;;  %389 = vmatpush2.msra.mxu1 %v302_v47 }
 0x1a5   :  { %390 = vmatprep.subr.mxu1 %v301_v48 }
 0x1a6   :  { %391 = vmatpush2.msra.mxu1 %v300_v49 }
 0x1a7   :  { %392 = vmatprep.subr.mxu1 %v299_v50 }
 0x1a8   :  { %393 = vmatpush2.msra.mxu1 %v298_v51 }
 0x1a9   :  { %394 = vmatprep.subr.mxu1 %v297_v52 }
 0x1aa   :  { %395 = vmatpush2.msra.mxu1 %v296_v53 }
 0x229   :  { %v217_v54 = vpop.xlane.xlu1 %216 }
 0x22a   :  { %v222_v55 = vmul.f32 0.005, %v217_v54 }
 0x22c   :  { %v224_v56 = vadd.f32 1e-05, %v222_v55 }
 0x22d   :  { %v221_v57 = vpop.xlane.xlu1 %220 }
 0x22e   :  { %452 = vrsqrt.f32 %v224_v56  ;;  %v223_v58 = vmul.f32 0.005, %v221_v57 }
 0x230   :  { %v225_v59 = vadd.f32 1e-05, %v223_v58 }
 0x232   :  { %454 = vrsqrt.f32 %v225_v59 }
 0x23b   :  { %v453_v0 = vpop.eup %452 }
 0x23c   :  { %v229_v1 = vmul.f32 %v453_v0, %v630_v16  ;;  %v228_v4 = vmul.f32 %v453_v0, %v627_v14  ;;  %v314_v14 = vld [vmem:[%s680_s6] sm:$0x3]  ;;  %s516_s6 = scalar_lea.vmem %s419_s23, 512 }
 0x23d   :  { %v319_v19 = vrot.slane %v314_v14, %v606_v13  ;;  %v323_v20 = vrot.slane %v314_v14, %v611_v15  ;;  %p517_p1 = scmp.ne.s32.totalorder %s419_s23, %s516_s6  ;;  %p522_p3 = scmp.lt.s32.totalorder %s516_s6, %s516_s6 }
 0x23e   :  { %v245_v5 = vmul.f32 %v241_v63, %v229_v1  ;;  %v244_v6 = vmul.f32 %v237_v62, %v228_v4 }
 0x23f   :  { %v455_v7 = vpop.eup %454  ;;  %p523_p4 = por %p522_p3, %p521_p2 }
 0x240   :  { %v231_v8 = vmul.f32 %v455_v7, %v639_v22  ;;  %v261_v9 = vadd.f32 %v257_v3, %v245_v5  ;;  %v260_v10 = vadd.f32 %v253_v2, %v244_v6  ;;  %v230_v11 = vmul.f32 %v455_v7, %v636_v21 }
 0x241   :  { %p524_p5 = pnand %p523_p4, %p517_p1 }
 0x242   :  { %v247_v12 = vmul.f32 %v241_v63, %v231_v8  ;;  %433 = vmatprep.mubr.msk.f32.mxu1 %vm194_vm1, %v261_v9  ;;  %v246_v17 = vmul.f32 %v237_v62, %v230_v11 }
 0x243   :  { %397 = vmatmul.mubr.f32.vlgmr.msra.gmra.mxu1 %v260_v10 }
 0x244   :  { %v263_v16 = vadd.f32 %v257_v3, %v247_v12  ;;  %v262_v18 = vadd.f32 %v253_v2, %v246_v17 }
 0x246   :  { %434 = vmatprep.mubr.msk.f32.mxu1 %vm194_vm1, %v263_v16 }
 0x247   :  { %403 = vmatmul.mubr.f32.gmra.mxu1 %v262_v18 }
 0x303   :  { %v398_v22 = vpop.f32.mrf.mxu1 }
 0x304   :  { %v399_v21 = vadd.f32 %v398_v22, %v319_v19 }
 0x305   :  { %v400_v23 = vpop.f32.mrf.mxu1 }
 0x306   :  { %409 = vst [vmem:[#allocation8] sm:$0xff] %v399_v21  ;;  %v401_v24 = vadd.f32 %v400_v23, %v323_v20 }
 0x307   :  { %v404_v25 = vpop.f32.mrf.mxu1 }
 0x308   :  { %410 = vst [vmem:[#allocation8 + $0x8] sm:$0xff] %v401_v24  ;;  %v405_v26 = vadd.f32 %v404_v25, %v319_v19 }
 0x309   :  { %v406_v27 = vpop.f32.mrf.mxu1 }
 0x30a   :  { %411 = vst [vmem:[#allocation8 + $0x10] sm:$0xff] %v405_v26  ;;  %v407_v28 = vadd.f32 %v406_v27, %v323_v20 }
 0x30c   :  { %412 = vst [vmem:[#allocation8 + $0x18] sm:$0xff] %v407_v28 }
 0x30d   :  { %527 = shalt.err (!%p524_p5)
}
 0x30e   :  { %424 = dma.vmem_to_hbm [thread:$0]  %s419_s23, 512, %s681_s7, [#allocation4], %s543_s27, %s543_s27, %s544_s28  }
 0x30f   :  { %540 = dma.done.wait [#allocation4], 512  }
 0x310   :  { %541 = vsyncadd [#allocation4], 4294966784 }
 0x311   :  { %428 = vsyncpa [#allocation3], 1 }
 0x312   :  { %429 = vsyncpa [#allocation6], 1 }
 0x313   :  { %430 = vsyncpa [#allocation4], 1 }

</bundles_post_ra>
